<compile_context>
chip_gen: v5e
topology: v5e:2x2
jax: 0.10.0
libtpu: 0.0.40
codegen_flags: <defaults>
</compile_context>

<pallas_src>
import functools

import jax
import jax.numpy as jnp
from jax.experimental import pallas as pl
from jax.experimental.pallas import tpu as pltpu

_INV_SQRT2 = 0.7071067811865476


def _round_up(x, m):
    return ((x + m - 1) // m) * m


def _probe_pipeline_mode():
    """Does this jax version accept pipeline_mode=pl.Buffered(1)? (narrow probe)"""
    try:
        pl.BlockSpec((8, 128), lambda i: (i, 0), pipeline_mode=pl.Buffered(1))
        return True
    except (TypeError, AttributeError):
        return False


_HAS_PIPELINE_MODE = _probe_pipeline_mode()


def _vmem_budget_bytes():
    """~75% of this chip's VMEM: 48 MiB on v7x (64 MiB), 96 MiB on v5e/v6e (128 MiB)."""
    try:
        cap = int(pltpu.get_tpu_info().vmem_capacity_bytes)
    except Exception:
        cap = 64 * 2**20  # conservative fallback (works on every generation)
    return max(32 * 2**20, min((cap * 3) // 4, 112 * 2**20))


def _estimate_vmem_bytes(tm, d_model, tdff, nk, xb, wb, single_buf_resident):
    io = 2 * 2 * tm * d_model * xb                       # x + out blocks, double-buffered
    wbufs = 1 if (nk == 1 and single_buf_resident) else 2
    weights = wbufs * 2 * d_model * tdff * wb            # W1^T chunk + W2^T chunk
    small = 2 * (3 * d_model + tdff) * 4                 # gamma/beta/b2 + b1
    scratch = tm * d_model * (4 + wb)                    # f32 residual acc + bf16 LN out
    interm = tm * tdff * (4 + wb)                        # f32 GELU h + its bf16 cast
    return io + weights + small + scratch + interm


def _select_tiles(M, d_model, dff, tm_req, tdff_req, xb, wb, budget,
                  single_buf_resident):
    """Choose (tm, tdff, nk) under the per-chip VMEM budget."""
    # --- token tile: 256-multiples for the MXU; >=2 blocks for the 2 TCs on v7x ---
    if M >= 512:
        tm = min(_round_up(max(tm_req, 256), 256), _round_up(M, 256))
        while _round_up(M, tm) // tm < 2 and tm > 256:
            tm -= 256
    else:
        tm = max(16, _round_up(min(max(tm_req, 16), _round_up(M, 16)), 16))

    def fits(tm_, tdff_, nk_):
        return _estimate_vmem_bytes(tm_, d_model, tdff_, nk_, xb, wb,
                                    single_buf_resident) <= budget

    def shrink_tm(tm_, tdff_, nk_):
        while tm_ > 256 and M >= 512 and not fits(tm_, tdff_, nk_):
            tm_ -= 256
        return tm_

    if tdff_req is not None and tdff_req < dff:
        assert dff % tdff_req == 0, "tdff must divide dim_feedforward"
        tdff, nk = tdff_req, dff // tdff_req
        tm = shrink_tm(tm, tdff, nk)
    else:
        tdff, nk = dff, 1                           # prefer fully-resident weights
        if not fits(tm, tdff, nk):
            tm_res = shrink_tm(tm, dff, 1)
            if fits(tm_res, dff, 1):
                tm = tm_res                         # resident wins: weights DMA'd once total
            elif dff % 128 == 0 and dff > 128:
                # Weights genuinely don't fit: chunk dff, keep tm large
                # (weight HBM re-stream traffic scales with M/tm).
                chosen = None
                for c in range(dff - 128, 127, -128):
                    if dff % c == 0 and fits(tm, c, dff // c):
                        chosen = c
                        break
                if chosen is None:
                    chosen = 128
                    tm = shrink_tm(tm, chosen, dff // chosen)
                tdff, nk = chosen, dff // chosen
    return tm, tdff, nk


def _ffn_kernel(x_ref, gamma_ref, beta_ref, w1_ref, b1_ref, w2_ref, b2_ref,
                o_ref, acc_ref, z_ref, *, eps, approximate_gelu):
    """One (tm, d_model) token block; grid axis 1 iterates dff chunks."""
    k = pl.program_id(1)

    @pl.when(k == 0)
    def _():
        # LayerNorm over the last axis (f32 statistics), once per token block;
        # LN output stashed in bf16 for the MXU.
        x = x_ref[...].astype(jnp.float32)
        mu = jnp.mean(x, axis=-1, keepdims=True)
        xc = x - mu
        var = jnp.mean(xc * xc, axis=-1, keepdims=True)
        z = xc * jax.lax.rsqrt(var + eps)
        z = z * gamma_ref[...] + beta_ref[...]
        z_ref[...] = z.astype(z_ref.dtype)
        # Residual + final bias live in the f32 accumulator.
        acc_ref[...] = x + b2_ref[...]

    # Linear1 chunk + GELU.
    h = jnp.dot(z_ref[...], w1_ref[...],
                preferred_element_type=jnp.float32) + b1_ref[...]
    if approximate_gelu:
        h = jax.nn.gelu(h, approximate=True)        # tanh -> EUP slot (free-ish)
    else:
        h = 0.5 * h * (1.0 + jax.lax.erf(h * _INV_SQRT2))  # exact nn.GELU()

    # TODO(synk): dropout is identity in eval/inference; training-mode dropout
    # masks (pltpu.prng_random_bits) intentionally omitted.

    # Linear2 chunk accumulated into the residual (GELU is elementwise in dff,
    # so chunk-and-accumulate is exact).
    acc_ref[...] += jnp.dot(h.astype(w2_ref.dtype), w2_ref[...],
                            preferred_element_type=jnp.float32)

    @pl.when(k == pl.num_programs(1) - 1)
    def _():
        o_ref[...] = acc_ref[...].astype(o_ref.dtype)


def prepare_ffn_params(gamma, beta, w1, b1, w2, b2, *,
                       compute_dtype=jnp.bfloat16):
    """One-time parameter prep (do at load time, NOT per forward call):
    transpose weights to (in, out) and cast them to the MXU-native dtype."""
    dff, d_model = w1.shape
    return {
        "gamma": gamma.reshape(1, d_model).astype(jnp.float32),
        "beta": beta.reshape(1, d_model).astype(jnp.float32),
        "w1_t": jnp.transpose(w1).astype(compute_dtype),   # (d_model, dff)
        "b1": b1.reshape(1, dff).astype(jnp.float32),
        "w2_t": jnp.transpose(w2).astype(compute_dtype),   # (dff, d_model)
        "b2": b2.reshape(1, d_model).astype(jnp.float32),
    }


def feedforward_sublayer(x, params, *, eps=1e-5, tm=512, tdff=None,
                         approximate_gelu=False):
    """x: [B, S, d_model] (f32 or bf16 activations; output matches x.dtype).
    params from prepare_ffn_params(); tdff=None => auto (full dff resident
    whenever it fits the per-chip VMEM budget, which it does for typical
    transformer sizes on v5e/v6e and up to d_model~1k/dff~4k on v7x)."""
    B, S, d_model = x.shape
    dff = params["w1_t"].shape[1]
    compute_dtype = params["w1_t"].dtype
    xb = jnp.dtype(x.dtype).itemsize
    wb = jnp.dtype(compute_dtype).itemsize

    M = B * S
    budget = _vmem_budget_bytes()
    tm_eff, tdff_eff, nk = _select_tiles(M, d_model, dff, tm, tdff, xb, wb,
                                         budget, _HAS_PIPELINE_MODE)
    M_pad = _round_up(M, tm_eff)

    # Padded token rows have var=0 -> z is finite (rsqrt(eps)); they flow
    # through the FFN harmlessly and are sliced off before returning.
    x2d = x.reshape(M, d_model)
    if M_pad != M:
        x2d = jnp.pad(x2d, ((0, M_pad - M), (0, 0)))

    def build(use_single_buffer):
        def spec(shape, index_map, single):
            kwargs = {}
            if single and use_single_buffer:
                # Constant-index operands don't need double buffering.
                kwargs["pipeline_mode"] = pl.Buffered(1)
            return pl.BlockSpec(shape, index_map, **kwargs)

        resident = nk == 1
        in_specs = [
            pl.BlockSpec((tm_eff, d_model), lambda i, k: (i, 0)),              # x
            spec((1, d_model), lambda i, k: (0, 0), True),                     # gamma
            spec((1, d_model), lambda i, k: (0, 0), True),                     # beta
            spec((d_model, tdff_eff), lambda i, k: (0, k), resident),          # W1^T
            spec((1, tdff_eff), lambda i, k: (0, k), resident),                # b1
            spec((tdff_eff, d_model), lambda i, k: (k, 0), resident),          # W2^T
            spec((1, d_model), lambda i, k: (0, 0), True),                     # b2
        ]
        return pl.pallas_call(
            functools.partial(_ffn_kernel, eps=eps,
                              approximate_gelu=approximate_gelu),
            out_shape=jax.ShapeDtypeStruct((M_pad, d_model), x.dtype),
            grid_spec=pltpu.PrefetchScalarGridSpec(
                num_scalar_prefetch=0,
                grid=(M_pad // tm_eff, nk),
                in_specs=in_specs,
                out_specs=pl.BlockSpec((tm_eff, d_model), lambda i, k: (i, 0)),
                scratch_shapes=[
                    pltpu.VMEM((tm_eff, d_model), jnp.float32),     # residual acc
                    pltpu.VMEM((tm_eff, d_model), compute_dtype),   # LN output
                ],
            ),
            compiler_params=pltpu.CompilerParams(
                dimension_semantics=("parallel", "arbitrary"),
                vmem_limit_bytes=int(budget),
            ),
        )

    args = (x2d, params["gamma"], params["beta"], params["w1_t"],
            params["b1"], params["w2_t"], params["b2"])
    if _HAS_PIPELINE_MODE:
        try:
            out2d = build(True)(*args)
        except pltpu.LoweringException:
            # Narrow fallback: Buffered(1) failed to lower on this jax/Mosaic.
            out2d = build(False)(*args)
    else:
        out2d = build(False)(*args)

    if M_pad != M:
        out2d = out2d[:M]
    return out2d.reshape(B, S, d_model)


def _reference(x, gamma, beta, w1, b1, w2, b2, eps=1e-5):
    mu = jnp.mean(x, -1, keepdims=True)
    var = jnp.mean((x - mu) ** 2, -1, keepdims=True)
    z = (x - mu) / jnp.sqrt(var + eps) * gamma + beta
    h = z @ w1.T + b1
    h = 0.5 * h * (1.0 + jax.lax.erf(h * _INV_SQRT2))
    return x + (h @ w2.T + b2)


def _run_case(key, B, S, d_model, dff, tdff):
    kx, k1, k2, k3, k4 = jax.random.split(key, 5)
    x = jax.random.normal(kx, (B, S, d_model), dtype=jnp.float32)
    w1 = jax.random.normal(k1, (dff, d_model), dtype=jnp.float32) * 0.05
    b1 = jax.random.normal(k2, (dff,), dtype=jnp.float32) * 0.05
    w2 = jax.random.normal(k3, (d_model, dff), dtype=jnp.float32) * 0.05
    b2 = jax.random.normal(k4, (d_model,), dtype=jnp.float32) * 0.05
    gamma = jnp.ones((d_model,), dtype=jnp.float32)
    beta = jnp.zeros((d_model,), dtype=jnp.float32)

    params = prepare_ffn_params(gamma, beta, w1, b1, w2, b2)
    out = feedforward_sublayer(x, params, tdff=tdff)
    jax.block_until_ready(out)

    ref = _reference(x, gamma, beta, w1, b1, w2, b2)
    # bf16 MXU inputs -> relaxed tolerance vs the pure-f32 reference.
    assert jnp.allclose(out, ref, atol=3e-2, rtol=3e-2)


if __name__ == "__main__":
    key = jax.random.PRNGKey(0)
    k_small, k_chunked, k_big = jax.random.split(key, 3)

    # Small shapes consistent with the module: batch=2, seq=8, d_model=32, dff=64.
    _run_case(k_small, B=2, S=8, d_model=32, dff=64, tdff=None)

    # Exercise the dff-chunked (reduction-axis) path with lane-aligned dims.
    _run_case(k_chunked, B=2, S=64, d_model=128, dff=256, tdff=128)

    # Exercise the 256-aligned token tile / >=2-token-block (megacore) path.
    _run_case(k_big, B=4, S=256, d_model=128, dff=256, tdff=None)

    print("KERNEL_OK")
</pallas_src>

<mosaic_0001>
module attributes {stable_mosaic.version = 11 : i64} {
  func.func @_ffn_kernel(%arg0: i32, %arg1: i32, %arg2: memref<16x32xf32, #tpu.memory_space<vmem>>, %arg3: memref<1x32xf32, #tpu.memory_space<vmem>>, %arg4: memref<1x32xf32, #tpu.memory_space<vmem>>, %arg5: memref<32x64xbf16, #tpu.memory_space<vmem>>, %arg6: memref<1x64xf32, #tpu.memory_space<vmem>>, %arg7: memref<64x32xbf16, #tpu.memory_space<vmem>>, %arg8: memref<1x32xf32, #tpu.memory_space<vmem>>, %arg9: memref<16x32xf32, #tpu.memory_space<vmem>>, %arg10: memref<16x32xf32, #tpu.memory_space<vmem>>, %arg11: memref<16x32xbf16, #tpu.memory_space<vmem>>) attributes {dimension_semantics = [#tpu.dimension_semantics<parallel>, #tpu.dimension_semantics<arbitrary>], iteration_bounds = array<i64: 1, 1>, scalar_prefetch = 0 : i64, scratch_operands = 2 : i64, tpu.core_type = #tpu.core_type<tc>, window_params = [{transform_indices = @transform_0, window_bounds = array<i64: 16, 32>}, {pipeline_mode = #tpu.pipeline_mode<synchronous>, transform_indices = @transform_1, window_bounds = array<i64: 1, 32>}, {pipeline_mode = #tpu.pipeline_mode<synchronous>, transform_indices = @transform_2, window_bounds = array<i64: 1, 32>}, {pipeline_mode = #tpu.pipeline_mode<synchronous>, transform_indices = @transform_3, window_bounds = array<i64: 32, 64>}, {pipeline_mode = #tpu.pipeline_mode<synchronous>, transform_indices = @transform_4, window_bounds = array<i64: 1, 64>}, {pipeline_mode = #tpu.pipeline_mode<synchronous>, transform_indices = @transform_5, window_bounds = array<i64: 64, 32>}, {pipeline_mode = #tpu.pipeline_mode<synchronous>, transform_indices = @transform_6, window_bounds = array<i64: 1, 32>}, {transform_indices = @transform_7, window_bounds = array<i64: 16, 32>}]} {
    %c0_i32 = arith.constant 0 : i32
    %0 = arith.cmpi eq, %arg1, %c0_i32 : i32
    %1 = arith.extui %0 : i1 to i32
    %c0_i32_0 = arith.constant 0 : i32
    %2 = arith.cmpi ne, %1, %c0_i32_0 : i32
    scf.if %2 {
      %c0_18 = arith.constant 0 : index
      %c0_19 = arith.constant 0 : index
      %26 = vector.load %arg2[%c0_18, %c0_19] : memref<16x32xf32, #tpu.memory_space<vmem>>, vector<16x32xf32>
      %cst_20 = arith.constant dense<0.000000e+00> : vector<16xf32>
      %27 = vector.multi_reduction <add>, %26, %cst_20 [1] : vector<16x32xf32> to vector<16xf32>
      %28 = vector.shape_cast %27 : vector<16xf32> to vector<16x1xf32>
      %cst_21 = arith.constant 3.200000e+01 : f32
      %29 = vector.broadcast %cst_21 : f32 to vector<16x1xf32>
      %30 = arith.divf %28, %29 : vector<16x1xf32>
      %31 = vector.broadcast %30 : vector<16x1xf32> to vector<16x32xf32>
      %32 = arith.subf %26, %31 : vector<16x32xf32>
      %33 = arith.mulf %32, %32 : vector<16x32xf32>
      %cst_22 = arith.constant dense<0.000000e+00> : vector<16xf32>
      %34 = vector.multi_reduction <add>, %33, %cst_22 [1] : vector<16x32xf32> to vector<16xf32>
      %35 = vector.shape_cast %34 : vector<16xf32> to vector<16x1xf32>
      %cst_23 = arith.constant 3.200000e+01 : f32
      %36 = vector.broadcast %cst_23 : f32 to vector<16x1xf32>
      %37 = arith.divf %35, %36 : vector<16x1xf32>
      %cst_24 = arith.constant 9.99999974E-6 : f32
      %38 = vector.broadcast %cst_24 : f32 to vector<16x1xf32>
      %39 = arith.addf %37, %38 : vector<16x1xf32>
      %40 = math.rsqrt %39 : vector<16x1xf32>
      %41 = vector.broadcast %40 : vector<16x1xf32> to vector<16x32xf32>
      %42 = arith.mulf %32, %41 : vector<16x32xf32>
      %c0_25 = arith.constant 0 : index
      %c0_26 = arith.constant 0 : index
      %43 = vector.load %arg3[%c0_25, %c0_26] : memref<1x32xf32, #tpu.memory_space<vmem>>, vector<1x32xf32>
      %44 = vector.broadcast %43 : vector<1x32xf32> to vector<16x32xf32>
      %45 = arith.mulf %42, %44 : vector<16x32xf32>
      %c0_27 = arith.constant 0 : index
      %c0_28 = arith.constant 0 : index
      %46 = vector.load %arg4[%c0_27, %c0_28] : memref<1x32xf32, #tpu.memory_space<vmem>>, vector<1x32xf32>
      %47 = vector.broadcast %46 : vector<1x32xf32> to vector<16x32xf32>
      %48 = arith.addf %45, %47 : vector<16x32xf32>
      %49 = arith.truncf %48 : vector<16x32xf32> to vector<16x32xbf16>
      %c0_29 = arith.constant 0 : index
      %c0_30 = arith.constant 0 : index
      %50 = vector.load %arg11[%c0_29, %c0_30] : memref<16x32xbf16, #tpu.memory_space<vmem>>, vector<16x32xbf16>
      tpu.vector_store %arg11[%c0_29, %c0_30], %49 {strides = array<i32>} : memref<16x32xbf16, #tpu.memory_space<vmem>>, vector<16x32xbf16>,
      %c0_31 = arith.constant 0 : index
      %c0_32 = arith.constant 0 : index
      %51 = vector.load %arg8[%c0_31, %c0_32] : memref<1x32xf32, #tpu.memory_space<vmem>>, vector<1x32xf32>
      %52 = vector.broadcast %51 : vector<1x32xf32> to vector<16x32xf32>
      %53 = arith.addf %26, %52 : vector<16x32xf32>
      %c0_33 = arith.constant 0 : index
      %c0_34 = arith.constant 0 : index
      %54 = vector.load %arg10[%c0_33, %c0_34] : memref<16x32xf32, #tpu.memory_space<vmem>>, vector<16x32xf32>
      tpu.vector_store %arg10[%c0_33, %c0_34], %53 {strides = array<i32>} : memref<16x32xf32, #tpu.memory_space<vmem>>, vector<16x32xf32>,
    } else {
    }
    %c0 = arith.constant 0 : index
    %c0_1 = arith.constant 0 : index
    %3 = vector.load %arg11[%c0, %c0_1] : memref<16x32xbf16, #tpu.memory_space<vmem>>, vector<16x32xbf16>
    %c0_2 = arith.constant 0 : index
    %c0_3 = arith.constant 0 : index
    %4 = vector.load %arg5[%c0_2, %c0_3] : memref<32x64xbf16, #tpu.memory_space<vmem>>, vector<32x64xbf16>
    %cst = arith.constant dense<0.000000e+00> : vector<16x64xf32>
    %5 = tpu.matmul %3, %4, %cst {dimension_numbers = #tpu.dot_dimension_numbers<[1], [0], [0], [1], [0, 0, 1, 1], [], []>} : vector<16x32xbf16>, vector<32x64xbf16>, vector<16x64xf32> -> vector<16x64xf32>
    %c0_4 = arith.constant 0 : index
    %c0_5 = arith.constant 0 : index
    %6 = vector.load %arg6[%c0_4, %c0_5] : memref<1x64xf32, #tpu.memory_space<vmem>>, vector<1x64xf32>
    %7 = vector.broadcast %6 : vector<1x64xf32> to vector<16x64xf32>
    %8 = arith.addf %5, %7 : vector<16x64xf32>
    %cst_6 = arith.constant 5.000000e-01 : f32
    %9 = vector.broadcast %cst_6 : f32 to vector<16x64xf32>
    %10 = arith.mulf %9, %8 : vector<16x64xf32>
    %cst_7 = arith.constant 0.707106769 : f32
    %11 = vector.broadcast %cst_7 : f32 to vector<16x64xf32>
    %12 = arith.mulf %8, %11 : vector<16x64xf32>
    %13 = math.erf %12 : vector<16x64xf32>
    %cst_8 = arith.constant 1.000000e+00 : f32
    %14 = vector.broadcast %cst_8 : f32 to vector<16x64xf32>
    %15 = arith.addf %14, %13 : vector<16x64xf32>
    %16 = arith.mulf %10, %15 : vector<16x64xf32>
    %c0_9 = arith.constant 0 : index
    %c0_10 = arith.constant 0 : index
    %17 = vector.load %arg10[%c0_9, %c0_10] : memref<16x32xf32, #tpu.memory_space<vmem>>, vector<16x32xf32>
    %18 = arith.truncf %16 : vector<16x64xf32> to vector<16x64xbf16>
    %c0_11 = arith.constant 0 : index
    %c0_12 = arith.constant 0 : index
    %19 = vector.load %arg7[%c0_11, %c0_12] : memref<64x32xbf16, #tpu.memory_space<vmem>>, vector<64x32xbf16>
    %cst_13 = arith.constant dense<0.000000e+00> : vector<16x32xf32>
    %20 = tpu.matmul %18, %19, %cst_13 {dimension_numbers = #tpu.dot_dimension_numbers<[1], [0], [0], [1], [0, 0, 1, 1], [], []>} : vector<16x64xbf16>, vector<64x32xbf16>, vector<16x32xf32> -> vector<16x32xf32>
    %21 = arith.addf %17, %20 : vector<16x32xf32>
    %c0_14 = arith.constant 0 : index
    %c0_15 = arith.constant 0 : index
    %22 = vector.load %arg10[%c0_14, %c0_15] : memref<16x32xf32, #tpu.memory_space<vmem>>, vector<16x32xf32>
    tpu.vector_store %arg10[%c0_14, %c0_15], %21 {strides = array<i32>} : memref<16x32xf32, #tpu.memory_space<vmem>>, vector<16x32xf32>,
    %c0_i32_16 = arith.constant 0 : i32
    %23 = arith.cmpi eq, %arg1, %c0_i32_16 : i32
    %24 = arith.extui %23 : i1 to i32
    %c0_i32_17 = arith.constant 0 : i32
    %25 = arith.cmpi ne, %24, %c0_i32_17 : i32
    scf.if %25 {
      %c0_18 = arith.constant 0 : index
      %c0_19 = arith.constant 0 : index
      %26 = vector.load %arg10[%c0_18, %c0_19] : memref<16x32xf32, #tpu.memory_space<vmem>>, vector<16x32xf32>
      %c0_20 = arith.constant 0 : index
      %c0_21 = arith.constant 0 : index
      %27 = vector.load %arg9[%c0_20, %c0_21] : memref<16x32xf32, #tpu.memory_space<vmem>>, vector<16x32xf32>
      tpu.vector_store %arg9[%c0_20, %c0_21], %26 {strides = array<i32>} : memref<16x32xf32, #tpu.memory_space<vmem>>, vector<16x32xf32>,
    } else {
    }
    return
  }
  func.func @transform_0(%arg0: i32, %arg1: i32) -> (i32, i32) {
    %c0_i32 = arith.constant 0 : i32
    %c0_i32_0 = arith.constant 0 : i32
    return %arg0, %c0_i32 : i32, i32
  }
  func.func @transform_1(%arg0: i32, %arg1: i32) -> (i32, i32) {
    %c0_i32 = arith.constant 0 : i32
    %c0_i32_0 = arith.constant 0 : i32
    %c0_i32_1 = arith.constant 0 : i32
    return %c0_i32, %c0_i32_0 : i32, i32
  }
  func.func @transform_2(%arg0: i32, %arg1: i32) -> (i32, i32) {
    %c0_i32 = arith.constant 0 : i32
    %c0_i32_0 = arith.constant 0 : i32
    %c0_i32_1 = arith.constant 0 : i32
    return %c0_i32, %c0_i32_0 : i32, i32
  }
  func.func @transform_3(%arg0: i32, %arg1: i32) -> (i32, i32) {
    %c0_i32 = arith.constant 0 : i32
    %c0_i32_0 = arith.constant 0 : i32
    return %c0_i32, %arg1 : i32, i32
  }
  func.func @transform_4(%arg0: i32, %arg1: i32) -> (i32, i32) {
    %c0_i32 = arith.constant 0 : i32
    %c0_i32_0 = arith.constant 0 : i32
    return %c0_i32, %arg1 : i32, i32
  }
  func.func @transform_5(%arg0: i32, %arg1: i32) -> (i32, i32) {
    %c0_i32 = arith.constant 0 : i32
    %c0_i32_0 = arith.constant 0 : i32
    return %arg1, %c0_i32 : i32, i32
  }
  func.func @transform_6(%arg0: i32, %arg1: i32) -> (i32, i32) {
    %c0_i32 = arith.constant 0 : i32
    %c0_i32_0 = arith.constant 0 : i32
    %c0_i32_1 = arith.constant 0 : i32
    return %c0_i32, %c0_i32_0 : i32, i32
  }
  func.func @transform_7(%arg0: i32, %arg1: i32) -> (i32, i32) {
    %c0_i32 = arith.constant 0 : i32
    %c0_i32_0 = arith.constant 0 : i32
    return %arg0, %c0_i32 : i32, i32
  }
}

</mosaic_0001>

<bundles_post_ra>
// kernel: tpu_custom_call.1
= control target key start
LH: loop header
LB: loop body
LE: loop exit
PB: predicated region body
PF: predicated region fallthrough
CT: control target
= control target key end

     0   :  { %vm34_vm0 = vcmask 261120   ;;  %s521_s0 = inlined_call_operand.vmem [shape: f32[16,32], index: 0, kind: input, shape index: {}]   ;;  %s522_s1 = inlined_call_operand.vmem [shape: f32[1,32], index: 1, kind: input, shape index: {}]   ;;  %s523_s2 = inlined_call_operand.vmem [shape: f32[1,32], index: 2, kind: input, shape index: {}]   ;;  %s524_s3 = inlined_call_operand.vmem [shape: bf16[32,64], index: 3, kind: input, shape index: {}]   ;;  %s525_s4 = inlined_call_operand.vmem [shape: f32[1,64], index: 4, kind: input, shape index: {}]   ;;  %s526_s5 = inlined_call_operand.vmem [shape: bf16[64,32], index: 5, kind: input, shape index: {}]   ;;  %s527_s6 = inlined_call_operand.vmem [shape: f32[1,32], index: 6, kind: input, shape index: {}]   ;;  %s528_s7 = inlined_call_operand.hbm [shape: f32[16,32], index: 7, kind: output, shape index: {}]  }
   0x1   :  { %v32_v0 = vld [vmem:[%s521_s0] sm:$0xff]  ;;  %v33_v3 = vld [vmem:[%s521_s0 + $0x8] sm:$0xff] }
   0x2   :  { %v369_v1 = vld [vmem:[%s527_s6] ss:$0 sm:$0xff]  ;;  %v35_v2 = vsel %vm34_vm0, %v32_v0, 0.0 }
   0x3   :  { %v107_v4 = vadd.f32 %v369_v1, %v32_v0  ;;  %36 = vadd.xlane.f32.xlu0 %v35_v2  ;;  %v108_v5 = vadd.f32 %v369_v1, %v33_v3 }
   0x4   :  { %12 = vsyncpa [#allocation5], 0  ;;  %v38_v6 = vsel %vm34_vm0, %v33_v3, 0.0  ;;  %v409_v7 = vmov 32.0   ;;  %v360_v27 = vld [vmem:[%s524_s3 + $0x8] sm:$0xff]  ;;  %v359_v30 = vld [vmem:[%s524_s3] sm:$0xff] }
   0x5   :  { %109 = vst.msk [vmem:[#allocation2] sm:$0xff] %vm34_vm0, %v107_v4  ;;  %373 = vrcp.f32 %v409_v7  ;;  %148 = vmatpush.bf16.msra.mxu0 %v360_v27  ;;  %v370_v40 = vld [vmem:[%s522_s1] ss:$0 sm:$0xff]  ;;  %vm100_vm6 = vcmask 257024   ;;  %s314_s22 = sshll.u32 %s528_s7, 4  ;;  %s411_s23 = smov 128   ;;  %s315_s22 = int_to_ptr.hbm [resolvable:$true] %s314_s22 }
   0x6   :  { %110 = vst.msk [vmem:[#allocation2 + $0x8] sm:$0xff] %vm34_vm0, %v108_v5  ;;  %v371_v43 = vld [vmem:[%s523_s2] ss:$0 sm:$0xff]  ;;  %s412_s24 = smov 8  }
   0x7   :  { %v372_v57 = vld [vmem:[%s525_s4] ss:$0 sm:$0xff] }
   0x9   :  { %149 = vmatpush.bf16.msra.mxu0 %v359_v30 }
   0xb   :  { %39 = vadd.xlane.f32.xlu0 %v38_v6  ;;  %v374_v8 = vpop.eup %373 }
   0xc   :  { %v42_v9 = vmul.f32 32.0, %v374_v8  ;;  %vm46_vm1 = vweird.f32 %v374_v8 }
   0xe   :  { %v43_v10 = vsub.f32 1.0, %v42_v9 }
  0x10   :  { %v44_v11 = vmul.f32 %v374_v8, %v43_v10 }
  0x12   :  { %v45_v12 = vadd.f32 %v374_v8, %v44_v11 }
  0x14   :  { %v47_v13 = vsel %vm46_vm1, %v374_v8, %v45_v12  ;;  %v364_v12 = vld [vmem:[%s526_s5 + $0x18] sm:$0xff] }
  0x15   :  { %287 = vmatpush.bf16.msra.mxu1 %v364_v12 }
  0x76   :  { %v37_v14 = vpop.xlane.xlu0 %36 }
  0x77   :  { %v48_v15 = vmul.f32 %v47_v13, %v37_v14 }
  0x79   :  { %v50_v16 = vsub.f32 %v32_v0, %v48_v15 }
  0x7b   :  { %v52_v17 = vmul.f32 %v50_v16, %v50_v16 }
  0x7d   :  { %v54_v18 = vsel %vm34_vm0, %v52_v17, 0.0 }
  0x7e   :  { %55 = vadd.xlane.f32.xlu1 %v54_v18  ;;  %v40_v19 = vpop.xlane.xlu0 %39 }
  0x7f   :  { %v49_v20 = vmul.f32 %v47_v13, %v40_v19 }
  0x81   :  { %v51_v21 = vsub.f32 %v33_v3, %v49_v20  ;;  %v363_v20 = vld [vmem:[%s526_s5 + $0x10] sm:$0xff] }
  0x82   :  { %288 = vmatpush.bf16.msra.mxu1 %v363_v20  ;;  %v244_v20 = vld [vmem:[#allocation2] sm:$0xff] }
  0x83   :  { %v53_v22 = vmul.f32 %v51_v21, %v51_v21 }
  0x85   :  { %v57_v23 = vsel %vm34_vm0, %v53_v22, 0.0 }
  0x86   :  { %58 = vadd.xlane.f32.xlu1 %v57_v23 }
  0xf1   :  { %v56_v24 = vpop.xlane.xlu1 %55 }
  0xf2   :  { %v60_v25 = vmul.f32 %v56_v24, %v47_v13 }
  0xf4   :  { %v62_v26 = vadd.f32 1e-05, %v60_v25 }
  0xf6   :  { %375 = vrsqrt.f32 %v62_v26  ;;  %vm70_vm3 = vweird.f32 %v62_v26 }
  0xf9   :  { %v59_v28 = vpop.xlane.xlu1 %58 }
  0xfa   :  { %v61_v29 = vmul.f32 %v59_v28, %v47_v13  ;;  %v362_v28 = vld [vmem:[%s526_s5 + $0x8] sm:$0xff] }
  0xfb   :  { %289 = vmatpush.bf16.msra.mxu1 %v362_v28 }
  0xfc   :  { %v376_v31 = vpop.eup %375  ;;  %v63_v32 = vadd.f32 1e-05, %v61_v29 }
  0xfd   :  { %v65_v33 = vmul.f32 %v376_v31, %v62_v26  ;;  %vm71_vm2 = vweird.f32 %v376_v31 }
  0xfe   :  { %377 = vrsqrt.f32 %v63_v32  ;;  %vm72_vm4 = vmor %vm70_vm3, %vm71_vm2  ;;  %vm80_vm7 = vweird.f32 %v63_v32  ;;  %vm279_vm2 = vcmask 523264  }
  0xff   :  { %v66_v34 = vmul.f32 %v376_v31, %v65_v33 }
 0x101   :  { %v67_v35 = vmul.f32 0.5, %v66_v34  ;;  %v361_v34 = vld [vmem:[%s526_s5] sm:$0xff]  ;;  %s410_s5 = smov [#allocation4]  }
 0x102   :  { %290 = vmatpush.bf16.msra.mxu1 %v361_v34  ;;  %s312_s19 = sshll.u32 %s410_s5, 4  ;;  %s313_s19 = int_to_ptr.vmem [resolvable:$true] %s312_s19 }
 0x103   :  { %v68_v36 = vsub.f32 1.5, %v67_v35 }
 0x104   :  { %v378_v37 = vpop.eup %377 }
 0x105   :  { %v69_v38 = vmul.f32 %v376_v31, %v68_v36  ;;  %v75_v39 = vmul.f32 %v378_v37, %v63_v32  ;;  %vm81_vm5 = vweird.f32 %v378_v37 }
 0x106   :  { %vm82_vm8 = vmor %vm80_vm7, %vm81_vm5 }
 0x107   :  { %v73_v41 = vsel %vm72_vm4, %v376_v31, %v69_v38  ;;  %v76_v42 = vmul.f32 %v378_v37, %v75_v39 }
 0x108   :  { %v84_v44 = vmul.f32 %v73_v41, %v50_v16 }
 0x109   :  { %v77_v45 = vmul.f32 0.5, %v76_v42 }
 0x10a   :  { %v90_v46 = vmul.f32 %v370_v40, %v84_v44 }
 0x10b   :  { %v78_v47 = vsub.f32 1.5, %v77_v45 }
 0x10c   :  { %v96_v48 = vadd.f32 %v371_v43, %v90_v46 }
 0x10d   :  { %v79_v49 = vmul.f32 %v378_v37, %v78_v47 }
 0x10e   :  { %v98_v50 = vpack.c.bf16 %v96_v48, %v96_v48 }
 0x10f   :  { %v83_v51 = vsel %vm82_vm8, %v378_v37, %v79_v49 }
 0x110   :  { %101 = vst.msk [vmem:[#allocation3] sm:$0xf] %vm100_vm6, %v98_v50  ;;  %v85_v52 = vmul.f32 %v83_v51, %v51_v21 }
 0x112   :  { %v91_v53 = vmul.f32 %v370_v40, %v85_v52 }
 0x114   :  { %v97_v54 = vadd.f32 %v371_v43, %v91_v53 }
 0x116   :  { %v99_v55 = vpack.c.bf16 %v97_v54, %v97_v54 }
 0x118   :  { %102 = vst.msk [vmem:[#allocation3 + $0x4] sm:$0xf] %vm100_vm6, %v99_v55 }
 0x11f   :  { %v358_v56 = vld [vmem:[#allocation3] sm:$0xff] }
 0x120   :  { %338 = vmatmul.msk.bf16.vlgmr.msra.gmra.mxu0 %vm34_vm0, %v358_v56 }
 0x19d   :  { %v151_v58 = vpop.f32.mrf.mxu0 }
 0x19e   :  { %v484_v59 = vadd.f32 %v372_v57, %v151_v58 }
 0x1a0   :  { %v487_v60 = vmul.f32 0.70710677, %v484_v59 }
 0x1a2   :  { %v160_v61 = vmul.f32 %v487_v60, %v487_v60 }
 0x1a4   :  { %v161_v62 = vmin.f32 %v160_v61, 16.0 }
 0x1a5   :  { %v153_v63 = vpop.f32.mrf.mxu0 }
 0x1a6   :  { %v162_v0 = vmul.f32 2.1237322e-06, %v161_v62  ;;  %v173_v1 = vmul.f32 3.8918573e-05, %v161_v62  ;;  %v491_v2 = vadd.f32 %v372_v57, %v153_v63 }
 0x1a8   :  { %v163_v3 = vadd.f32 0.00028619796, %v162_v0  ;;  %v174_v4 = vadd.f32 0.001143296, %v173_v1  ;;  %v494_v5 = vmul.f32 0.70710677, %v491_v2 }
 0x1aa   :  { %v175_v6 = vmul.f32 %v174_v4, %v161_v62  ;;  %v200_v7 = vmul.f32 %v494_v5, %v494_v5  ;;  %v164_v8 = vmul.f32 %v163_v3, %v161_v62 }
 0x1ac   :  { %v176_v9 = vadd.f32 0.014752088, %v175_v6  ;;  %v201_v10 = vmin.f32 %v200_v7, 16.0  ;;  %v165_v15 = vadd.f32 0.0036580483, %v164_v8 }
 0x1ae   :  { %v177_v11 = vmul.f32 %v176_v9, %v161_v62  ;;  %v202_v13 = vmul.f32 2.1237322e-06, %v201_v10  ;;  %v213_v14 = vmul.f32 3.8918573e-05, %v201_v10  ;;  %v166_v23 = vmul.f32 %v165_v15, %v161_v62 }
 0x1af   :  { %v157_v15 = vmul.f32 0.5, %v491_v2 }
 0x1b0   :  { %v178_v16 = vadd.f32 0.112945676, %v177_v11  ;;  %v203_v17 = vadd.f32 0.00028619796, %v202_v13  ;;  %v214_v18 = vadd.f32 0.001143296, %v213_v14 }
 0x1b1   :  { %v167_v30 = vadd.f32 0.05243302, %v166_v23  ;;  %v156_v14 = vmul.f32 0.5, %v484_v59 }
 0x1b2   :  { %v179_v19 = vmul.f32 %v178_v16, %v161_v62  ;;  %v204_v21 = vmul.f32 %v203_v17, %v201_v10  ;;  %v215_v22 = vmul.f32 %v214_v18, %v201_v10 }
 0x1b3   :  { %v168_v36 = vmul.f32 %v167_v30, %v161_v62 }
 0x1b4   :  { %v180_v24 = vadd.f32 0.4994258, %v179_v19  ;;  %v205_v25 = vadd.f32 0.0036580483, %v204_v21  ;;  %v216_v26 = vadd.f32 0.014752088, %v215_v22 }
 0x1b5   :  { %v169_v41 = vadd.f32 0.18741608, %v168_v36 }
 0x1b6   :  { %v181_v27 = vmul.f32 %v180_v24, %v161_v62  ;;  %v217_v29 = vmul.f32 %v216_v26, %v201_v10  ;;  %v206_v32 = vmul.f32 %v205_v25, %v201_v10 }
 0x1b7   :  { %v170_v46 = vmul.f32 %v169_v41, %v161_v62 }
 0x1b8   :  { %v182_v31 = vadd.f32 1.0, %v181_v27  ;;  %v218_v33 = vadd.f32 0.112945676, %v217_v29  ;;  %v207_v37 = vadd.f32 0.05243302, %v206_v32 }
 0x1b9   :  { %v171_v52 = vadd.f32 1.1283791, %v170_v46 }
 0x1ba   :  { %379 = vrcp.f32 %v182_v31  ;;  %v219_v35 = vmul.f32 %v218_v33, %v201_v10  ;;  %v208_v43 = vmul.f32 %v207_v37, %v201_v10  ;;  %v194_v48 = vand.u32 2147483648, %v182_v31 }
 0x1bb   :  { %v192_v50 = vand.u32 2147483647, %v182_v31  ;;  %vm188_vm10 = vweird.f32 %v182_v31  ;;  %v172_v61 = vmul.f32 %v171_v52, %v487_v60 }
 0x1bc   :  { %v220_v38 = vadd.f32 0.4994258, %v219_v35  ;;  %v209_v49 = vadd.f32 0.18741608, %v208_v43  ;;  %v195_v55 = vor.u32 1.1754944e-38, %v194_v48 }
 0x1bd   :  { %vm193_vm12 = vcmp.eq.f32.partialorder %v192_v50, 8.507059e+37 }
 0x1be   :  { %v221_v39 = vmul.f32 %v220_v38, %v201_v10  ;;  %v210_v56 = vmul.f32 %v209_v49, %v201_v10 }
 0x1c0   :  { %v380_v40 = vpop.eup %379  ;;  %v222_v44 = vadd.f32 1.0, %v221_v39  ;;  %v211_v62 = vadd.f32 1.1283791, %v210_v56 }
 0x1c1   :  { %v184_v42 = vmul.f32 %v380_v40, %v182_v31  ;;  %vm189_vm9 = vweird.f32 %v380_v40 }
 0x1c2   :  { %381 = vrcp.f32 %v222_v44  ;;  %vm190_vm11 = vmor %vm188_vm10, %vm189_vm9  ;;  %v234_v0 = vand.u32 2147483648, %v222_v44  ;;  %v232_v4 = vand.u32 2147483647, %v222_v44  ;;  %vm228_vm14 = vweird.f32 %v222_v44 }
 0x1c3   :  { %v185_v45 = vsub.f32 1.0, %v184_v42  ;;  %v212_v9 = vmul.f32 %v211_v62, %v494_v5  ;;  %v245_v5 = vld [vmem:[#allocation2 + $0x8] sm:$0xff] }
 0x1c4   :  { %v235_v7 = vor.u32 1.1754944e-38, %v234_v0  ;;  %vm233_vm1 = vcmp.eq.f32.partialorder %v232_v4, 8.507059e+37 }
 0x1c5   :  { %v186_v47 = vmul.f32 %v380_v40, %v185_v45 }
 0x1c7   :  { %v187_v51 = vadd.f32 %v380_v40, %v186_v47 }
 0x1c8   :  { %v382_v53 = vpop.eup %381 }
 0x1c9   :  { %v191_v54 = vsel %vm190_vm11, %v380_v40, %v187_v51  ;;  %v224_v57 = vmul.f32 %v382_v53, %v222_v44  ;;  %vm229_vm13 = vweird.f32 %v382_v53 }
 0x1ca   :  { %v196_v58 = vsel %vm193_vm12, %v195_v55, %v191_v54  ;;  %vm230_vm15 = vmor %vm228_vm14, %vm229_vm13 }
 0x1cb   :  { %v225_v63 = vsub.f32 1.0, %v224_v57  ;;  %v197_v1 = vmul.f32 %v196_v58, %v172_v61 }
 0x1cd   :  { %v226_v3 = vmul.f32 %v382_v53, %v225_v63  ;;  %v339_v8 = vclamps-f32 %v197_v1, 1.0 }
 0x1cf   :  { %v227_v6 = vadd.f32 %v382_v53, %v226_v3  ;;  %v240_v13 = vadd.f32 1.0, %v339_v8 }
 0x1d1   :  { %v231_v10 = vsel %vm230_vm15, %v382_v53, %v227_v6  ;;  %v242_v17 = vmul.f32 %v240_v13, %v156_v14 }
 0x1d2   :  { %v236_v11 = vsel %vm233_vm1, %v235_v7, %v231_v10 }
 0x1d3   :  { %v237_v12 = vmul.f32 %v236_v11, %v212_v9 }
 0x1d5   :  { %v340_v60 = vclamps-f32 %v237_v12, 1.0 }
 0x1d7   :  { %v241_v16 = vadd.f32 1.0, %v340_v60 }
 0x1d9   :  { %v243_v18 = vmul.f32 %v241_v16, %v157_v15 }
 0x1db   :  { %v246_v19 = vpack.c.bf16 %v243_v18, %v242_v17 }
 0x1dd   :  { %357 = vmatmul.msk.bf16.vlgmr.msra.gmra.mxu1 %vm279_vm2, %v246_v19 }
 0x25a   :  { %v292_v21 = vpop.f32.mrf.mxu1 }
 0x25b   :  { %v297_v22 = vadd.f32 %v292_v21, %v244_v20 }
 0x25d   :  { %299 = vst.msk [vmem:[#allocation2] sm:$0xff] %vm34_vm0, %v297_v22 }
 0x262   :  { %v294_v23 = vpop.f32.mrf.mxu1 }
 0x263   :  { %v298_v24 = vadd.f32 %v294_v23, %v245_v5 }
 0x264   :  { %v304_v25 = vld [vmem:[#allocation2] sm:$0xff] }
 0x265   :  { %300 = vst.msk [vmem:[#allocation2 + $0x8] sm:$0xff] %vm34_vm0, %v298_v24 }
 0x266   :  { %306 = vst.msk [vmem:[#allocation4] sm:$0xff] %vm34_vm0, %v304_v25 }
 0x26c   :  { %v305_v59 = vld [vmem:[#allocation2 + $0x8] sm:$0xff] }
 0x26d   :  { %307 = vst.msk [vmem:[#allocation4 + $0x8] sm:$0xff] %vm34_vm0, %v305_v59 }
 0x26e   :  { %320 = dma.vmem_to_hbm [thread:$0]  %s313_s19, 256, %s315_s22, [#allocation5], %s411_s23, %s411_s23, %s412_s24  }
 0x26f   :  { %407 = dma.done.wait [#allocation5], 256  }
 0x270   :  { %408 = vsyncadd [#allocation5], 4294967040 }
 0x271   :  { %325 = vsyncpa [#allocation5], 1 }

</bundles_post_ra>
